<compile_context>
chip_gen: v7x
topology: tpu7x:2x2x1
jax: 0.10.0
libtpu: 0.0.40
codegen_flags: <defaults>
</compile_context>

<pallas_src>
import jax
import jax.numpy as jnp
from jax.experimental import pallas as pl
from jax.experimental.pallas import tpu as pltpu

# ---- model-size constants (consistent with the PyTorch module) ----
GENERATOR_OUTPUT_SIZE = 16          # feature dim of `data_input`
LABEL_SIZE = 8                      # one-hot label dim
DISC_HIDDEN = 100                   # DiscriminatorInputLayerOutputSize
HIDDEN_PAD = 128                    # padded to a full lane tile
K_IN = GENERATOR_OUTPUT_SIZE + LABEL_SIZE   # fused input width (24)
BN_EPS = 1e-5
LEAKY_SLOPE = 0.2


def _round_up(x, m):
    return ((x + m - 1) // m) * m


def _leaky(x):
    return jnp.where(x > 0, x, LEAKY_SLOPE * x)


# --------------------------------------------------------------------------
# Kernel: everything is [features, batch] so batch is the minor (lane) axis.
# --------------------------------------------------------------------------
def discriminator_kernel(
    x_ref,      # [16, TB]  data, transposed
    y_ref,      # [ 8, TB]  label, transposed
    xs_ref, xo_ref,     # [16, 1]  BN1 folded scale / shift
    ys_ref, yo_ref,     # [ 8, 1]  BN2 folded scale / shift
    wft_ref,    # [256, 24] fused (block-structured, zero-padded) W1/W2, pre-transposed
    bf_ref,     # [256, 1]  fused b1/b2 (zero-padded)
    w3_ref,     # [256, 1]  final-layer weight (zero-padded)
    b3_ref,     # [1, 1]    final-layer bias
    out_ref,    # [1, TB]
):
    # ---- BatchNorm (stats precomputed -> per-feature affine) ----
    xn = x_ref[...] * xs_ref[...] + xo_ref[...]          # [16, TB]
    yn = y_ref[...] * ys_ref[...] + yo_ref[...]          # [ 8, TB]

    # ---- fused branch matmul (one MXU call instead of two) ----
    cat = jnp.concatenate([xn, yn], axis=0)              # [24, TB]
    h = jnp.dot(wft_ref[...], cat, preferred_element_type=jnp.float32)
    h = _leaky(h + bf_ref[...])                          # [256, TB]

    # ---- hidden_layer (2H -> 1) as VPU multiply + sublane reduce (lane-dense) ----
    z = jnp.sum(h * w3_ref[...], axis=0, keepdims=True) + b3_ref[...]   # [1, TB]
    z = _leaky(z)

    # ---- sigmoid: EUP exp + approximate reciprocal (EUP slot, free here) ----
    out_ref[...] = pl.reciprocal(1.0 + jnp.exp(-z), approx=True).astype(out_ref.dtype)


# --------------------------------------------------------------------------
# Weight packing: fold the two Linear layers into one padded, transposed slab.
# --------------------------------------------------------------------------
def _pack_weights(params):
    H, HP, D, L = DISC_HIDDEN, HIDDEN_PAD, GENERATOR_OUTPUT_SIZE, LABEL_SIZE
    wft = jnp.zeros((2 * HP, K_IN), jnp.float32)
    wft = wft.at[0:H, 0:D].set(params["w1"])                 # data branch
    wft = wft.at[HP:HP + H, D:K_IN].set(params["w2"])        # label branch
    bf = jnp.zeros((2 * HP, 1), jnp.float32)
    bf = bf.at[0:H, 0].set(params["b1"])
    bf = bf.at[HP:HP + H, 0].set(params["b2"])
    w3c = jnp.zeros((2 * HP, 1), jnp.float32)
    w3c = w3c.at[0:H, 0].set(params["w3"][0, 0:H])
    w3c = w3c.at[HP:HP + H, 0].set(params["w3"][0, H:2 * H])
    b3 = params["b3"].reshape(1, 1).astype(jnp.float32)
    return wft, bf, w3c, b3


def discriminator_forward(data, label, params, *, max_block_b=1024):
    B = data.shape[0]
    D, L, HP = GENERATOR_OUTPUT_SIZE, LABEL_SIZE, HIDDEN_PAD
    data = data.astype(jnp.float32)
    label = label.astype(jnp.float32)

    # --- full-batch training-mode BatchNorm1d stats, folded to scale/shift.
    #     Computed on the REAL batch before any padding (per-tile stats would
    #     silently change the math). ---
    def bn_scale_shift(x, gamma, beta):
        mean = jnp.mean(x, axis=0)
        var = jnp.mean(jnp.square(x - mean), axis=0)          # biased variance
        scale = gamma * jax.lax.rsqrt(var + BN_EPS)
        shift = beta - mean * scale
        return scale[:, None], shift[:, None]                 # [feat, 1] columns

    xs, xo = bn_scale_shift(data, params["bn1_gamma"], params["bn1_beta"])
    ys, yo = bn_scale_shift(label, params["bn2_gamma"], params["bn2_beta"])
    wft, bf, w3c, b3 = _pack_weights(params)

    # --- lane-dense layout: batch on the lane axis, padded to the block size ---
    tb = min(max_block_b, _round_up(B, 128))
    b_pad = _round_up(B, tb)
    data_t = jnp.zeros((D, b_pad), jnp.float32).at[:, :B].set(data.T)
    label_t = jnp.zeros((L, b_pad), jnp.float32).at[:, :B].set(label.T)

    full = lambda shape: pl.BlockSpec(shape, lambda i: (0, 0))
    out = pl.pallas_call(
        discriminator_kernel,
        out_shape=jax.ShapeDtypeStruct((1, b_pad), jnp.float32),
        grid=(b_pad // tb,),
        in_specs=[
            pl.BlockSpec((D, tb), lambda i: (0, i)),
            pl.BlockSpec((L, tb), lambda i: (0, i)),
            full((D, 1)), full((D, 1)),
            full((L, 1)), full((L, 1)),
            full((2 * HP, K_IN)),
            full((2 * HP, 1)),
            full((2 * HP, 1)),
            full((1, 1)),
        ],
        out_specs=pl.BlockSpec((1, tb), lambda i: (0, i)),
        compiler_params=pltpu.CompilerParams(dimension_semantics=("parallel",)),
    )(data_t, label_t, xs, xo, ys, yo, wft, bf, w3c, b3)

    return out[0, :B][:, None]                                # [B, 1], like PyTorch


# --------------------------------------------------------------------------
# Parameters in PyTorch convention (Linear weight [out, in]; weight_init std).
# --------------------------------------------------------------------------
def init_params(key, std=0.02):
    k1, k2, k3 = jax.random.split(key, 3)
    return {
        "bn1_gamma": jnp.ones((GENERATOR_OUTPUT_SIZE,), jnp.float32),
        "bn1_beta": jnp.zeros((GENERATOR_OUTPUT_SIZE,), jnp.float32),
        "w1": jax.random.normal(k1, (DISC_HIDDEN, GENERATOR_OUTPUT_SIZE), jnp.float32) * std,
        "b1": jnp.zeros((DISC_HIDDEN,), jnp.float32),
        "bn2_gamma": jnp.ones((LABEL_SIZE,), jnp.float32),
        "bn2_beta": jnp.zeros((LABEL_SIZE,), jnp.float32),
        "w2": jax.random.normal(k2, (DISC_HIDDEN, LABEL_SIZE), jnp.float32) * std,
        "b2": jnp.zeros((DISC_HIDDEN,), jnp.float32),
        "w3": jax.random.normal(k3, (1, 2 * DISC_HIDDEN), jnp.float32) * std,
        "b3": jnp.zeros((1,), jnp.float32),
    }


def reference_forward(data, label, params):
    """Pure-JAX reference mirroring the PyTorch module."""
    def bn(x, gamma, beta):
        mean = jnp.mean(x, axis=0)
        var = jnp.mean(jnp.square(x - mean), axis=0)
        return (x - mean) * jax.lax.rsqrt(var + BN_EPS) * gamma + beta

    x1 = _leaky(bn(data, params["bn1_gamma"], params["bn1_beta"]) @ params["w1"].T + params["b1"])
    y = _leaky(bn(label, params["bn2_gamma"], params["bn2_beta"]) @ params["w2"].T + params["b2"])
    x2 = jnp.concatenate([x1, y], axis=1)
    x3 = _leaky(x2 @ params["w3"].T + params["b3"])
    return jax.nn.sigmoid(x3)


if __name__ == "__main__":
    key = jax.random.PRNGKey(0)
    kp, kd, kl = jax.random.split(key, 3)

    B = 8
    params = init_params(kp)
    data = jax.random.normal(kd, (B, GENERATOR_OUTPUT_SIZE), jnp.float32)
    label_ids = jax.random.randint(kl, (B,), 0, LABEL_SIZE)
    label = jax.nn.one_hot(label_ids, LABEL_SIZE, dtype=jnp.float32)

    out = jax.block_until_ready(discriminator_forward(data, label, params))
    ref = reference_forward(data, label, params)

    assert out.shape == (B, 1), out.shape
    assert bool(jnp.all((out >= 0) & (out <= 1)))
    err = float(jnp.max(jnp.abs(out - ref)))
    assert err < 5e-3, f"max |kernel - reference| = {err}"
    print("KERNEL_OK")
</pallas_src>

<mosaic_0001>
module attributes {stable_mosaic.version = 11 : i64} {
  func.func @discriminator_kernel(%arg0: i32, %arg1: memref<16x128xf32, #tpu.memory_space<vmem>>, %arg2: memref<8x128xf32, #tpu.memory_space<vmem>>, %arg3: memref<16x1xf32, #tpu.memory_space<vmem>>, %arg4: memref<16x1xf32, #tpu.memory_space<vmem>>, %arg5: memref<8x1xf32, #tpu.memory_space<vmem>>, %arg6: memref<8x1xf32, #tpu.memory_space<vmem>>, %arg7: memref<256x24xf32, #tpu.memory_space<vmem>>, %arg8: memref<256x1xf32, #tpu.memory_space<vmem>>, %arg9: memref<256x1xf32, #tpu.memory_space<vmem>>, %arg10: memref<1x1xf32, #tpu.memory_space<vmem>>, %arg11: memref<1x128xf32, #tpu.memory_space<vmem>>) attributes {dimension_semantics = [#tpu.dimension_semantics<parallel>], iteration_bounds = array<i64: 1>, scalar_prefetch = 0 : i64, scratch_operands = 0 : i64, tpu.core_type = #tpu.core_type<tc>, window_params = [{transform_indices = @transform_0, window_bounds = array<i64: 16, 128>}, {transform_indices = @transform_1, window_bounds = array<i64: 8, 128>}, {pipeline_mode = #tpu.pipeline_mode<synchronous>, transform_indices = @transform_2, window_bounds = array<i64: 16, 1>}, {pipeline_mode = #tpu.pipeline_mode<synchronous>, transform_indices = @transform_3, window_bounds = array<i64: 16, 1>}, {pipeline_mode = #tpu.pipeline_mode<synchronous>, transform_indices = @transform_4, window_bounds = array<i64: 8, 1>}, {pipeline_mode = #tpu.pipeline_mode<synchronous>, transform_indices = @transform_5, window_bounds = array<i64: 8, 1>}, {pipeline_mode = #tpu.pipeline_mode<synchronous>, transform_indices = @transform_6, window_bounds = array<i64: 256, 24>}, {pipeline_mode = #tpu.pipeline_mode<synchronous>, transform_indices = @transform_7, window_bounds = array<i64: 256, 1>}, {pipeline_mode = #tpu.pipeline_mode<synchronous>, transform_indices = @transform_8, window_bounds = array<i64: 256, 1>}, {pipeline_mode = #tpu.pipeline_mode<synchronous>, transform_indices = @transform_9, window_bounds = array<i64: 1, 1>}, {transform_indices = @transform_10, window_bounds = array<i64: 1, 128>}]} {
    %c0 = arith.constant 0 : index
    %c0_0 = arith.constant 0 : index
    %0 = vector.load %arg1[%c0, %c0_0] : memref<16x128xf32, #tpu.memory_space<vmem>>, vector<16x128xf32>
    %c0_1 = arith.constant 0 : index
    %c0_2 = arith.constant 0 : index
    %1 = vector.load %arg3[%c0_1, %c0_2] : memref<16x1xf32, #tpu.memory_space<vmem>>, vector<16x1xf32>
    %2 = vector.broadcast %1 : vector<16x1xf32> to vector<16x128xf32>
    %3 = arith.mulf %0, %2 : vector<16x128xf32>
    %c0_3 = arith.constant 0 : index
    %c0_4 = arith.constant 0 : index
    %4 = vector.load %arg4[%c0_3, %c0_4] : memref<16x1xf32, #tpu.memory_space<vmem>>, vector<16x1xf32>
    %5 = vector.broadcast %4 : vector<16x1xf32> to vector<16x128xf32>
    %6 = arith.addf %3, %5 : vector<16x128xf32>
    %c0_5 = arith.constant 0 : index
    %c0_6 = arith.constant 0 : index
    %7 = vector.load %arg2[%c0_5, %c0_6] : memref<8x128xf32, #tpu.memory_space<vmem>>, vector<8x128xf32>
    %c0_7 = arith.constant 0 : index
    %c0_8 = arith.constant 0 : index
    %8 = vector.load %arg5[%c0_7, %c0_8] : memref<8x1xf32, #tpu.memory_space<vmem>>, vector<8x1xf32>
    %9 = vector.broadcast %8 : vector<8x1xf32> to vector<8x128xf32>
    %10 = arith.mulf %7, %9 : vector<8x128xf32>
    %c0_9 = arith.constant 0 : index
    %c0_10 = arith.constant 0 : index
    %11 = vector.load %arg6[%c0_9, %c0_10] : memref<8x1xf32, #tpu.memory_space<vmem>>, vector<8x1xf32>
    %12 = vector.broadcast %11 : vector<8x1xf32> to vector<8x128xf32>
    %13 = arith.addf %10, %12 : vector<8x128xf32>
    %14 = tpu.concatenate %6, %13 in 0 : vector<16x128xf32>, vector<8x128xf32> -> vector<24x128xf32>
    %c0_11 = arith.constant 0 : index
    %c0_12 = arith.constant 0 : index
    %15 = vector.load %arg7[%c0_11, %c0_12] : memref<256x24xf32, #tpu.memory_space<vmem>>, vector<256x24xf32>
    %cst = arith.constant dense<0.000000e+00> : vector<256x128xf32>
    %16 = tpu.matmul %15, %14, %cst {dimension_numbers = #tpu.dot_dimension_numbers<[1], [0], [0], [1], [0, 0, 1, 1], [], []>} : vector<256x24xf32>, vector<24x128xf32>, vector<256x128xf32> -> vector<256x128xf32>
    %c0_13 = arith.constant 0 : index
    %c0_14 = arith.constant 0 : index
    %17 = vector.load %arg8[%c0_13, %c0_14] : memref<256x1xf32, #tpu.memory_space<vmem>>, vector<256x1xf32>
    %18 = vector.broadcast %17 : vector<256x1xf32> to vector<256x128xf32>
    %19 = arith.addf %16, %18 : vector<256x128xf32>
    %cst_15 = arith.constant 0.000000e+00 : f32
    %20 = vector.broadcast %cst_15 : f32 to vector<256x128xf32>
    %21 = arith.cmpf ogt, %19, %20 : vector<256x128xf32>
    %cst_16 = arith.constant 2.000000e-01 : f32
    %22 = vector.broadcast %cst_16 : f32 to vector<256x128xf32>
    %23 = arith.mulf %22, %19 : vector<256x128xf32>
    %24 = arith.select %21, %19, %23 : vector<256x128xi1>, vector<256x128xf32>
    %c0_17 = arith.constant 0 : index
    %c0_18 = arith.constant 0 : index
    %25 = vector.load %arg9[%c0_17, %c0_18] : memref<256x1xf32, #tpu.memory_space<vmem>>, vector<256x1xf32>
    %26 = vector.broadcast %25 : vector<256x1xf32> to vector<256x128xf32>
    %27 = arith.mulf %24, %26 : vector<256x128xf32>
    %cst_19 = arith.constant dense<0.000000e+00> : vector<128xf32>
    %28 = vector.multi_reduction <add>, %27, %cst_19 [0] : vector<256x128xf32> to vector<128xf32>
    %29 = vector.shape_cast %28 : vector<128xf32> to vector<1x128xf32>
    %c0_20 = arith.constant 0 : index
    %c0_21 = arith.constant 0 : index
    %30 = vector.load %arg10[%c0_20, %c0_21] : memref<1x1xf32, #tpu.memory_space<vmem>>, vector<1x1xf32>
    %31 = vector.broadcast %30 : vector<1x1xf32> to vector<1x128xf32>
    %32 = arith.addf %29, %31 : vector<1x128xf32>
    %cst_22 = arith.constant 0.000000e+00 : f32
    %33 = vector.broadcast %cst_22 : f32 to vector<1x128xf32>
    %34 = arith.cmpf ogt, %32, %33 : vector<1x128xf32>
    %cst_23 = arith.constant 2.000000e-01 : f32
    %35 = vector.broadcast %cst_23 : f32 to vector<1x128xf32>
    %36 = arith.mulf %35, %32 : vector<1x128xf32>
    %37 = arith.select %34, %32, %36 : vector<1x128xi1>, vector<1x128xf32>
    %cst_24 = arith.constant 0.000000e+00 : f32
    %38 = vector.broadcast %cst_24 : f32 to vector<1x128xf32>
    %39 = arith.subf %38, %37 : vector<1x128xf32>
    %40 = math.exp %39 : vector<1x128xf32>
    %cst_25 = arith.constant 1.000000e+00 : f32
    %41 = vector.broadcast %cst_25 : f32 to vector<1x128xf32>
    %42 = arith.addf %41, %40 : vector<1x128xf32>
    %43 = tpu.reciprocal %42 {approx = true} : vector<1x128xf32> -> vector<1x128xf32>
    %c0_26 = arith.constant 0 : index
    %c0_27 = arith.constant 0 : index
    %44 = vector.load %arg11[%c0_26, %c0_27] : memref<1x128xf32, #tpu.memory_space<vmem>>, vector<1x128xf32>
    tpu.vector_store %arg11[%c0_26, %c0_27], %43 {strides = array<i32>} : memref<1x128xf32, #tpu.memory_space<vmem>>, vector<1x128xf32>,
    return
  }
  func.func @transform_0(%arg0: i32) -> (i32, i32) {
    %c0_i32 = arith.constant 0 : i32
    %c0_i32_0 = arith.constant 0 : i32
    return %c0_i32, %arg0 : i32, i32
  }
  func.func @transform_1(%arg0: i32) -> (i32, i32) {
    %c0_i32 = arith.constant 0 : i32
    %c0_i32_0 = arith.constant 0 : i32
    return %c0_i32, %arg0 : i32, i32
  }
  func.func @transform_2(%arg0: i32) -> (i32, i32) {
    %c0_i32 = arith.constant 0 : i32
    %c0_i32_0 = arith.constant 0 : i32
    %c0_i32_1 = arith.constant 0 : i32
    return %c0_i32, %c0_i32_0 : i32, i32
  }
  func.func @transform_3(%arg0: i32) -> (i32, i32) {
    %c0_i32 = arith.constant 0 : i32
    %c0_i32_0 = arith.constant 0 : i32
    %c0_i32_1 = arith.constant 0 : i32
    return %c0_i32, %c0_i32_0 : i32, i32
  }
  func.func @transform_4(%arg0: i32) -> (i32, i32) {
    %c0_i32 = arith.constant 0 : i32
    %c0_i32_0 = arith.constant 0 : i32
    %c0_i32_1 = arith.constant 0 : i32
    return %c0_i32, %c0_i32_0 : i32, i32
  }
  func.func @transform_5(%arg0: i32) -> (i32, i32) {
    %c0_i32 = arith.constant 0 : i32
    %c0_i32_0 = arith.constant 0 : i32
    %c0_i32_1 = arith.constant 0 : i32
    return %c0_i32, %c0_i32_0 : i32, i32
  }
  func.func @transform_6(%arg0: i32) -> (i32, i32) {
    %c0_i32 = arith.constant 0 : i32
    %c0_i32_0 = arith.constant 0 : i32
    %c0_i32_1 = arith.constant 0 : i32
    return %c0_i32, %c0_i32_0 : i32, i32
  }
  func.func @transform_7(%arg0: i32) -> (i32, i32) {
    %c0_i32 = arith.constant 0 : i32
    %c0_i32_0 = arith.constant 0 : i32
    %c0_i32_1 = arith.constant 0 : i32
    return %c0_i32, %c0_i32_0 : i32, i32
  }
  func.func @transform_8(%arg0: i32) -> (i32, i32) {
    %c0_i32 = arith.constant 0 : i32
    %c0_i32_0 = arith.constant 0 : i32
    %c0_i32_1 = arith.constant 0 : i32
    return %c0_i32, %c0_i32_0 : i32, i32
  }
  func.func @transform_9(%arg0: i32) -> (i32, i32) {
    %c0_i32 = arith.constant 0 : i32
    %c0_i32_0 = arith.constant 0 : i32
    %c0_i32_1 = arith.constant 0 : i32
    return %c0_i32, %c0_i32_0 : i32, i32
  }
  func.func @transform_10(%arg0: i32) -> (i32, i32) {
    %c0_i32 = arith.constant 0 : i32
    %c0_i32_0 = arith.constant 0 : i32
    return %c0_i32, %arg0 : i32, i32
  }
}

</mosaic_0001>

<bundles_post_ra>
// kernel: tpu_custom_call.1
= control target key start
LH: loop header
LB: loop body
LE: loop exit
PB: predicated region body
PF: predicated region fallthrough
CT: control target
= control target key end

     0   :  { %s1783_s0 = inlined_call_operand.vmem [shape: f32[16,128], index: 0, kind: input, shape index: {}]   ;;  %s1784_s1 = inlined_call_operand.vmem [shape: f32[8,128], index: 1, kind: input, shape index: {}]   ;;  %s1785_s2 = inlined_call_operand.vmem [shape: f32[16,1], index: 2, kind: input, shape index: {}]   ;;  %s1786_s3 = inlined_call_operand.vmem [shape: f32[16,1], index: 3, kind: input, shape index: {}]   ;;  %s1787_s4 = inlined_call_operand.vmem [shape: f32[8,1], index: 4, kind: input, shape index: {}]   ;;  %s1788_s5 = inlined_call_operand.vmem [shape: f32[8,1], index: 5, kind: input, shape index: {}]   ;;  %s1789_s6 = inlined_call_operand.vmem [shape: f32[256,24], index: 6, kind: input, shape index: {}]   ;;  %s1790_s7 = inlined_call_operand.vmem [shape: f32[256,1], index: 7, kind: input, shape index: {}]   ;;  %s1791_s8 = inlined_call_operand.vmem [shape: f32[256,1], index: 8, kind: input, shape index: {}]   ;;  %s1792_s9 = inlined_call_operand.<no memory space> [shape: f32[1,1], index: 9, kind: input, shape index: {}]   ;;  %s1793_s10 = inlined_call_operand.hbm [shape: f32[1,128], index: 10, kind: output, shape index: {}]  }
   0x1   :  { %v15_v0 = vstv %s1792_s9 }
   0x2   :  { %16 = vst [vmem:[#allocation2] sm:$0x1] %v15_v0 }
   0x3   :  { %v54_v1 = vld [vmem:[%s1786_s3] sm:$0xff]  ;;  %v1181_v3 = vmov 0   ;;  %v55_v4 = vld [vmem:[%s1786_s3 + $0x8] sm:$0xff]  ;;  %v118_v10 = vld [vmem:[%s1790_s7 + $0x18] sm:$0xff]  ;;  %vm307_vm0 = vcmask 195584  }
   0x4   :  { %v40_v2 = vld [vmem:[%s1785_s2] sm:$0xff]  ;;  %1152 = vset.pattern.permute.xlu1 %v1181_v3  ;;  %1151 = vset.pattern.permute.xlu0 %v1181_v3  ;;  %v41_v5 = vld [vmem:[%s1785_s2 + $0x8] sm:$0xff]  ;;  %v117_v11 = vld [vmem:[%s1790_s7 + $0x10] sm:$0xff] }
   0x5   :  { %58 = vperm.xlu1 %1152, %v54_v1   ;;  %44 = vperm.xlu0 %1151, %v40_v2   ;;  %v76_v6 = vld [vmem:[%s1788_s5] sm:$0xff]  ;;  %v116_v8 = vld [vmem:[%s1790_s7 + $0x8] sm:$0xff]  ;;  %v122_v14 = vld [vmem:[%s1790_s7 + $0x38] sm:$0xff] }
   0x6   :  { %v69_v7 = vld [vmem:[%s1787_s4] sm:$0xff]  ;;  %v120_v12 = vld [vmem:[%s1790_s7 + $0x28] sm:$0xff]  ;;  %v121_v15 = vld [vmem:[%s1790_s7 + $0x30] sm:$0xff] }
   0x7   :  { %v115_v9 = vld [vmem:[%s1790_s7] sm:$0xff]  ;;  %v124_v18 = vld [vmem:[%s1790_s7 + $0x48] sm:$0xff] }
   0x8   :  { %v119_v13 = vld [vmem:[%s1790_s7 + $0x20] sm:$0xff] }
   0x9   :  { %63 = vperm.xlu1 %1152, %v55_v4   ;;  %49 = vperm.xlu0 %1151, %v41_v5   ;;  %v83_v16 = vld [vmem:[%s1789_s6] sm:$0xff] }
   0xa   :  { %1093 = vmatprep.mubr.msk.f32.mxu0 %vm307_vm0, %v83_v16  ;;  %v99_v17 = vld [vmem:[%s1789_s6 + $0x80] sm:$0xff] }
   0xb   :  { %v123_v19 = vld [vmem:[%s1790_s7 + $0x40] sm:$0xff]  ;;  %1117 = vmatprep.mubr.msk.f32.mxu1 %vm307_vm0, %v99_v17 }
   0xd   :  { %79 = vperm.xlu1 %1152, %v76_v6   ;;  %72 = vperm.xlu0 %1151, %v69_v7  }
  0x11   :  { %154 = vperm.xlu1 %1152, %v116_v8   ;;  %149 = vperm.xlu0 %1151, %v115_v9  }
  0x15   :  { %164 = vperm.xlu1 %1152, %v118_v10   ;;  %159 = vperm.xlu0 %1151, %v117_v11  }
  0x19   :  { %174 = vperm.xlu1 %1152, %v120_v12   ;;  %169 = vperm.xlu0 %1151, %v119_v13  }
  0x1d   :  { %184 = vperm.xlu1 %1152, %v122_v14   ;;  %179 = vperm.xlu0 %1151, %v121_v15  }
  0x1e   :  { %17 = vsyncpa [#allocation4], 0  ;;  %v126_v20 = vld [vmem:[%s1790_s7 + $0x58] sm:$0xff]  ;;  %v125_v21 = vld [vmem:[%s1790_s7 + $0x50] sm:$0xff] }
  0x1f   :  { %v128_v22 = vld [vmem:[%s1790_s7 + $0x68] sm:$0xff]  ;;  %v127_v23 = vld [vmem:[%s1790_s7 + $0x60] sm:$0xff]  ;;  %v130_v24 = vld [vmem:[%s1790_s7 + $0x78] sm:$0xff] }
  0x20   :  { %v129_v25 = vld [vmem:[%s1790_s7 + $0x70] sm:$0xff]  ;;  %v132_v26 = vld [vmem:[%s1790_s7 + $0x88] sm:$0xff]  ;;  %v131_v27 = vld [vmem:[%s1790_s7 + $0x80] sm:$0xff] }
  0x21   :  { %194 = vperm.xlu1 %1152, %v124_v18   ;;  %189 = vperm.xlu0 %1151, %v123_v19   ;;  %v134_v28 = vld [vmem:[%s1790_s7 + $0x98] sm:$0xff]  ;;  %v133_v29 = vld [vmem:[%s1790_s7 + $0x90] sm:$0xff]  ;;  %v136_v30 = vld [vmem:[%s1790_s7 + $0xa8] sm:$0xff] }
  0x22   :  { %v135_v31 = vld [vmem:[%s1790_s7 + $0xa0] sm:$0xff]  ;;  %v726_v32 = vld [vmem:[%s1791_s8 + $0x8] sm:$0xff]  ;;  %v728_v34 = vld [vmem:[%s1791_s8 + $0x18] sm:$0xff] }
  0x23   :  { %v725_v33 = vld [vmem:[%s1791_s8] sm:$0xff]  ;;  %v727_v35 = vld [vmem:[%s1791_s8 + $0x10] sm:$0xff]  ;;  %v730_v36 = vld [vmem:[%s1791_s8 + $0x28] sm:$0xff] }
  0x24   :  { %v729_v37 = vld [vmem:[%s1791_s8 + $0x20] sm:$0xff]  ;;  %v732_v38 = vld [vmem:[%s1791_s8 + $0x38] sm:$0xff]  ;;  %v731_v39 = vld [vmem:[%s1791_s8 + $0x30] sm:$0xff] }
  0x25   :  { %204 = vperm.xlu1 %1152, %v126_v20   ;;  %199 = vperm.xlu0 %1151, %v125_v21   ;;  %v734_v40 = vld [vmem:[%s1791_s8 + $0x48] sm:$0xff]  ;;  %v733_v41 = vld [vmem:[%s1791_s8 + $0x40] sm:$0xff]  ;;  %v736_v42 = vld [vmem:[%s1791_s8 + $0x58] sm:$0xff] }
  0x26   :  { %v735_v43 = vld [vmem:[%s1791_s8 + $0x50] sm:$0xff]  ;;  %v738_v44 = vld [vmem:[%s1791_s8 + $0x68] sm:$0xff]  ;;  %v737_v45 = vld [vmem:[%s1791_s8 + $0x60] sm:$0xff] }
  0x27   :  { %v740_v46 = vld [vmem:[%s1791_s8 + $0x78] sm:$0xff]  ;;  %v739_v47 = vld [vmem:[%s1791_s8 + $0x70] sm:$0xff]  ;;  %v742_v48 = vld [vmem:[%s1791_s8 + $0x88] sm:$0xff] }
  0x28   :  { %v741_v49 = vld [vmem:[%s1791_s8 + $0x80] sm:$0xff]  ;;  %v744_v50 = vld [vmem:[%s1791_s8 + $0x98] sm:$0xff]  ;;  %v743_v51 = vld [vmem:[%s1791_s8 + $0x90] sm:$0xff] }
  0x29   :  { %214 = vperm.xlu1 %1152, %v128_v22   ;;  %209 = vperm.xlu0 %1151, %v127_v23   ;;  %v745_v52 = vld [vmem:[%s1791_s8 + $0xa0] sm:$0xff]  ;;  %v137_v53 = vld [vmem:[%s1790_s7 + $0xb0] sm:$0xff]  ;;  %v746_v54 = vld [vmem:[%s1791_s8 + $0xa8] sm:$0xff] }
  0x2a   :  { %v138_v55 = vld [vmem:[%s1790_s7 + $0xb8] sm:$0xff]  ;;  %v747_v56 = vld [vmem:[%s1791_s8 + $0xb0] sm:$0xff]  ;;  %v139_v57 = vld [vmem:[%s1790_s7 + $0xc0] sm:$0xff] }
  0x2b   :  { %v748_v58 = vld [vmem:[%s1791_s8 + $0xb8] sm:$0xff]  ;;  %v140_v59 = vld [vmem:[%s1790_s7 + $0xc8] sm:$0xff]  ;;  %v749_v60 = vld [vmem:[%s1791_s8 + $0xc0] sm:$0xff] }
  0x2c   :  { %v141_v61 = vld [vmem:[%s1790_s7 + $0xd0] sm:$0xff]  ;;  %v750_v62 = vld [vmem:[%s1791_s8 + $0xc8] sm:$0xff]  ;;  %v142_v63 = vld [vmem:[%s1790_s7 + $0xd8] sm:$0xff] }
  0x2d   :  { %224 = vperm.xlu1 %1152, %v130_v24   ;;  %219 = vperm.xlu0 %1151, %v129_v25   ;;  %v751_v0 = vld [vmem:[%s1791_s8 + $0xd0] sm:$0xff]  ;;  %v143_v1 = vld [vmem:[%s1790_s7 + $0xe0] sm:$0xff]  ;;  %v752_v2 = vld [vmem:[%s1791_s8 + $0xd8] sm:$0xff] }
  0x2e   :  { %v144_v3 = vld [vmem:[%s1790_s7 + $0xe8] sm:$0xff]  ;;  %v753_v4 = vld [vmem:[%s1791_s8 + $0xe0] sm:$0xff]  ;;  %v145_v5 = vld [vmem:[%s1790_s7 + $0xf0] sm:$0xff] }
  0x2f   :  { %v38_v8 = vld [vmem:[%s1783_s0] sm:$0xff]  ;;  %v39_v9 = vld [vmem:[%s1783_s0 + $0x8] sm:$0xff]  ;;  %v146_v11 = vld [vmem:[%s1790_s7 + $0xf8] sm:$0xff] }
  0x30   :  { %v754_v10 = vld [vmem:[%s1791_s8 + $0xe8] sm:$0xff]  ;;  %v68_v16 = vld [vmem:[%s1784_s1] sm:$0xff]  ;;  %v756_v17 = vld [vmem:[%s1791_s8 + $0xf8] sm:$0xff] }
  0x31   :  { %234 = vperm.xlu1 %1152, %v132_v26   ;;  %229 = vperm.xlu0 %1151, %v131_v27   ;;  %v755_v18 = vld [vmem:[%s1791_s8 + $0xf0] sm:$0xff]  ;;  %v986_v25 = vld [vmem:[#allocation2] sm:$0x1]  ;;  %v84_v27 = vld [vmem:[%s1789_s6 + $0x8] sm:$0xff] }
  0x35   :  { %244 = vperm.xlu1 %1152, %v134_v28   ;;  %239 = vperm.xlu0 %1151, %v133_v29   ;;  %v100_v28 = vld [vmem:[%s1789_s6 + $0x88] sm:$0xff]  ;;  %v85_v29 = vld [vmem:[%s1789_s6 + $0x10] sm:$0xff] }
  0x39   :  { %254 = vperm.xlu1 %1152, %v136_v30   ;;  %249 = vperm.xlu0 %1151, %v135_v31   ;;  %v101_v30 = vld [vmem:[%s1789_s6 + $0x90] sm:$0xff]  ;;  %v86_v31 = vld [vmem:[%s1789_s6 + $0x18] sm:$0xff] }
  0x3d   :  { %764 = vperm.xlu1 %1152, %v726_v32   ;;  %759 = vperm.xlu0 %1151, %v725_v33   ;;  %v102_v32 = vld [vmem:[%s1789_s6 + $0x98] sm:$0xff]  ;;  %v87_v33 = vld [vmem:[%s1789_s6 + $0x20] sm:$0xff] }
  0x41   :  { %774 = vperm.xlu1 %1152, %v728_v34   ;;  %769 = vperm.xlu0 %1151, %v727_v35   ;;  %v103_v34 = vld [vmem:[%s1789_s6 + $0xa0] sm:$0xff]  ;;  %v88_v35 = vld [vmem:[%s1789_s6 + $0x28] sm:$0xff] }
  0x45   :  { %784 = vperm.xlu1 %1152, %v730_v36   ;;  %779 = vperm.xlu0 %1151, %v729_v37   ;;  %v104_v36 = vld [vmem:[%s1789_s6 + $0xa8] sm:$0xff]  ;;  %v89_v37 = vld [vmem:[%s1789_s6 + $0x30] sm:$0xff] }
  0x49   :  { %794 = vperm.xlu1 %1152, %v732_v38   ;;  %789 = vperm.xlu0 %1151, %v731_v39   ;;  %v105_v38 = vld [vmem:[%s1789_s6 + $0xb0] sm:$0xff]  ;;  %v90_v39 = vld [vmem:[%s1789_s6 + $0x38] sm:$0xff] }
  0x4d   :  { %804 = vperm.xlu1 %1152, %v734_v40   ;;  %799 = vperm.xlu0 %1151, %v733_v41   ;;  %v106_v40 = vld [vmem:[%s1789_s6 + $0xb8] sm:$0xff]  ;;  %v91_v41 = vld [vmem:[%s1789_s6 + $0x40] sm:$0xff] }
  0x51   :  { %814 = vperm.xlu1 %1152, %v736_v42   ;;  %809 = vperm.xlu0 %1151, %v735_v43   ;;  %v107_v42 = vld [vmem:[%s1789_s6 + $0xc0] sm:$0xff]  ;;  %v92_v43 = vld [vmem:[%s1789_s6 + $0x48] sm:$0xff] }
  0x55   :  { %824 = vperm.xlu1 %1152, %v738_v44   ;;  %819 = vperm.xlu0 %1151, %v737_v45   ;;  %v108_v44 = vld [vmem:[%s1789_s6 + $0xc8] sm:$0xff]  ;;  %v93_v45 = vld [vmem:[%s1789_s6 + $0x50] sm:$0xff] }
  0x59   :  { %834 = vperm.xlu1 %1152, %v740_v46   ;;  %829 = vperm.xlu0 %1151, %v739_v47   ;;  %v109_v46 = vld [vmem:[%s1789_s6 + $0xd0] sm:$0xff]  ;;  %v94_v47 = vld [vmem:[%s1789_s6 + $0x58] sm:$0xff] }
  0x5d   :  { %844 = vperm.xlu1 %1152, %v742_v48   ;;  %839 = vperm.xlu0 %1151, %v741_v49   ;;  %v110_v48 = vld [vmem:[%s1789_s6 + $0xd8] sm:$0xff]  ;;  %v95_v49 = vld [vmem:[%s1789_s6 + $0x60] sm:$0xff] }
  0x61   :  { %854 = vperm.xlu1 %1152, %v744_v50   ;;  %849 = vperm.xlu0 %1151, %v743_v51   ;;  %v111_v50 = vld [vmem:[%s1789_s6 + $0xe0] sm:$0xff]  ;;  %v96_v51 = vld [vmem:[%s1789_s6 + $0x68] sm:$0xff] }
  0x65   :  { %859 = vperm.xlu1 %1152, %v745_v52   ;;  %259 = vperm.xlu0 %1151, %v137_v53   ;;  %v112_v52 = vld [vmem:[%s1789_s6 + $0xe8] sm:$0xff]  ;;  %v97_v53 = vld [vmem:[%s1789_s6 + $0x70] sm:$0xff] }
  0x69   :  { %864 = vperm.xlu1 %1152, %v746_v54   ;;  %264 = vperm.xlu0 %1151, %v138_v55   ;;  %v113_v54 = vld [vmem:[%s1789_s6 + $0xf0] sm:$0xff]  ;;  %v98_v55 = vld [vmem:[%s1789_s6 + $0x78] sm:$0xff] }
  0x6d   :  { %869 = vperm.xlu1 %1152, %v747_v56   ;;  %269 = vperm.xlu0 %1151, %v139_v57   ;;  %v114_v56 = vld [vmem:[%s1789_s6 + $0xf8] sm:$0xff]  ;;  %s1182_s6 = smov [#allocation3]  }
  0x6e   :  { %s1012_s8 = sshll.u32 %s1182_s6, 4  ;;  %s1013_s8 = int_to_ptr.vmem [resolvable:$true] %s1012_s8 }
  0x6f   :  { %s1157_s14 = scalar_lea.vmem %s1013_s8, 16  ;;  %s1161_s15 = scalar_lea.vmem %s1013_s8, 32 }
  0x70   :  { %p1158_p0 = scmp.ne.s32.totalorder %s1013_s8, %s1157_s14  ;;  %p1162_p1 = scmp.lt.s32.totalorder %s1013_s8, %s1013_s8 }
  0x71   :  { %874 = vperm.xlu1 %1152, %v748_v58   ;;  %274 = vperm.xlu0 %1151, %v140_v59   ;;  %p1163_p2 = scmp.lt.s32.totalorder %s1161_s15, %s1157_s14 }
  0x73   :  { %p1164_p3 = por %p1163_p2, %p1162_p1 }
  0x75   :  { %879 = vperm.xlu1 %1152, %v749_v60   ;;  %279 = vperm.xlu0 %1151, %v141_v61   ;;  %p1165_p4 = pnand %p1164_p3, %p1158_p0 }
  0x79   :  { %884 = vperm.xlu1 %1152, %v750_v62   ;;  %284 = vperm.xlu0 %1151, %v142_v63  }
  0x7d   :  { %889 = vperm.xlu1 %1152, %v751_v0   ;;  %289 = vperm.xlu0 %1151, %v143_v1  }
  0x81   :  { %894 = vperm.xlu1 %1152, %v752_v2   ;;  %294 = vperm.xlu0 %1151, %v144_v3  }
  0x84   :  { %v59_v6 = vpop.permute.xlu1 %58  ;;  %v45_v7 = vpop.permute.xlu0 %44 }
  0x85   :  { %899 = vperm.xlu1 %1152, %v753_v4   ;;  %299 = vperm.xlu0 %1151, %v145_v5   ;;  %v52_v12 = vmul.f32 %v45_v7, %v38_v8 }
  0x87   :  { %v66_v19 = vadd.f32 %v59_v6, %v52_v12 }
  0x88   :  { %v64_v13 = vpop.permute.xlu1 %63  ;;  %v50_v14 = vpop.permute.xlu0 %49 }
  0x89   :  { %v53_v15 = vmul.f32 %v50_v14, %v39_v9  ;;  %904 = vperm.xlu1 %1152, %v754_v10   ;;  %304 = vperm.xlu0 %1151, %v146_v11  }
  0x8b   :  { %v67_v20 = vadd.f32 %v64_v13, %v53_v15 }
  0x8c   :  { %v73_v21 = vpop.permute.xlu0 %72  ;;  %v80_v24 = vpop.permute.xlu1 %79 }
  0x8d   :  { %v1141_v22 = vpack.c.bf16 %v67_v20, %v66_v19  ;;  %v75_v23 = vmul.f32 %v73_v21, %v68_v16  ;;  %914 = vperm.xlu1 %1152, %v756_v17   ;;  %909 = vperm.xlu0 %1151, %v755_v18  }
  0x8f   :  { %v82_v26 = vadd.f32 %v80_v24, %v75_v23  ;;  %1142 = vmatprep.subr.bf16.mxu0 %v1141_v22  ;;  %1145 = vmatprep.subr.bf16.mxu1 %v1141_v22 }
  0x90   :  { %1144 = vmatpush3.bf16.msra.mxu0 %v1141_v22  ;;  %1147 = vmatpush3.bf16.msra.mxu1 %v1141_v22  ;;  %v150_v57 = vpop.permute.xlu0 %149  ;;  %v155_v58 = vpop.permute.xlu1 %154 }
  0x91   :  { %989 = vperm.xlu0 %1151, %v986_v25   ;;  %1091 = vmatprep.subr.mxu0 %v82_v26 }
  0x92   :  { %1146 = vmatprep.subr.mxu1 %v82_v26 }
  0x94   :  { %1092 = vmatpush3.msra.mxu0 %v82_v26  ;;  %1148 = vmatpush3.msra.mxu1 %v82_v26  ;;  %v160_v59 = vpop.permute.xlu0 %159  ;;  %v165_v60 = vpop.permute.xlu1 %164 }
  0x95   :  { %1094 = vmatmul.mubr.msk.f32.vlgmr.msra.gmra.mrb[0].mxu0 %vm307_vm0, %v84_v27  ;;  %1118 = vmatmul.mubr.msk.f32.vlgmr.msra.gmra.mrb[0].mxu1 %vm307_vm0, %v100_v28 }
  0x96   :  { %1096 = vmatprep.mubr.msk.f32.mxu0 %vm307_vm0, %v85_v29  ;;  %1120 = vmatprep.mubr.msk.f32.mxu1 %vm307_vm0, %v101_v30 }
  0x98   :  { %v1588_v61 = vpop.permute.xlu0 %169  ;;  %v1590_v62 = vpop.permute.xlu1 %174 }
  0x99   :  { %1097 = vmatmul.mubr.msk.f32.gmra.mrb[2].mxu0 %vm307_vm0, %v86_v31  ;;  %1121 = vmatmul.mubr.msk.f32.gmra.mrb[2].mxu1 %vm307_vm0, %v102_v32 }
  0x9a   :  { %1099 = vmatprep.mubr.msk.f32.mxu0 %vm307_vm0, %v87_v33  ;;  %1123 = vmatprep.mubr.msk.f32.mxu1 %vm307_vm0, %v103_v34 }
  0x9c   :  { %v1592_v63 = vpop.permute.xlu0 %179  ;;  %v1594_v0 = vpop.permute.xlu1 %184 }
  0x9d   :  { %1100 = vmatmul.mubr.msk.f32.gmra.mrb[4].mxu0 %vm307_vm0, %v88_v35  ;;  %1124 = vmatmul.mubr.msk.f32.gmra.mrb[4].mxu1 %vm307_vm0, %v104_v36 }
  0x9e   :  { %1102 = vmatprep.mubr.msk.f32.mxu0 %vm307_vm0, %v89_v37  ;;  %1126 = vmatprep.mubr.msk.f32.mxu1 %vm307_vm0, %v105_v38 }
  0xa0   :  { %v1596_v1 = vpop.permute.xlu0 %189  ;;  %v1598_v2 = vpop.permute.xlu1 %194 }
  0xa1   :  { %1103 = vmatmul.mubr.msk.f32.gmra.mrb[6].mxu0 %vm307_vm0, %v90_v39  ;;  %1127 = vmatmul.mubr.msk.f32.gmra.mrb[6].mxu1 %vm307_vm0, %v106_v40 }
  0xa2   :  { %1105 = vmatprep.mubr.msk.f32.mxu0 %vm307_vm0, %v91_v41  ;;  %1129 = vmatprep.mubr.msk.f32.mxu1 %vm307_vm0, %v107_v42 }
  0xa4   :  { %v1600_v3 = vpop.permute.xlu0 %199  ;;  %v1602_v4 = vpop.permute.xlu1 %204 }
  0xa5   :  { %1106 = vmatmul.mubr.msk.f32.gmra.mrb[8].mxu0 %vm307_vm0, %v92_v43  ;;  %1130 = vmatmul.mubr.msk.f32.gmra.mrb[8].mxu1 %vm307_vm0, %v108_v44 }
  0xa6   :  { %1108 = vmatprep.mubr.msk.f32.mxu0 %vm307_vm0, %v93_v45  ;;  %1132 = vmatprep.mubr.msk.f32.mxu1 %vm307_vm0, %v109_v46 }
  0xa8   :  { %v1604_v5 = vpop.permute.xlu0 %209  ;;  %v1606_v6 = vpop.permute.xlu1 %214 }
  0xa9   :  { %1109 = vmatmul.mubr.msk.f32.gmra.mrb[10].mxu0 %vm307_vm0, %v94_v47  ;;  %1133 = vmatmul.mubr.msk.f32.gmra.mrb[10].mxu1 %vm307_vm0, %v110_v48 }
  0xaa   :  { %1111 = vmatprep.mubr.msk.f32.mxu0 %vm307_vm0, %v95_v49  ;;  %1135 = vmatprep.mubr.msk.f32.mxu1 %vm307_vm0, %v111_v50 }
  0xac   :  { %v1608_v7 = vpop.permute.xlu0 %219  ;;  %v1610_v8 = vpop.permute.xlu1 %224 }
  0xad   :  { %1112 = vmatmul.mubr.msk.f32.gmra.mrb[12].mxu0 %vm307_vm0, %v96_v51  ;;  %1136 = vmatmul.mubr.msk.f32.gmra.mrb[12].mxu1 %vm307_vm0, %v112_v52 }
  0xae   :  { %1114 = vmatprep.mubr.msk.f32.mxu0 %vm307_vm0, %v97_v53  ;;  %1138 = vmatprep.mubr.msk.f32.mxu1 %vm307_vm0, %v113_v54 }
  0xb0   :  { %v1612_v9 = vpop.permute.xlu0 %229  ;;  %v1614_v10 = vpop.permute.xlu1 %234 }
  0xb1   :  { %1115 = vmatmul.mubr.msk.f32.gmra.mrb[14].mxu0 %vm307_vm0, %v98_v55  ;;  %1139 = vmatmul.mubr.msk.f32.gmra.mrb[14].mxu1 %vm307_vm0, %v114_v56 }
  0xb4   :  { %v1616_v11 = vpop.permute.xlu0 %239  ;;  %v1618_v12 = vpop.permute.xlu1 %244 }
  0xb8   :  { %v1620_v13 = vpop.permute.xlu0 %249  ;;  %v1622_v14 = vpop.permute.xlu1 %254 }
  0xbc   :  { %v760_v15 = vpop.permute.xlu0 %759  ;;  %v765_v16 = vpop.permute.xlu1 %764 }
  0xc0   :  { %v770_v17 = vpop.permute.xlu0 %769  ;;  %v775_v18 = vpop.permute.xlu1 %774 }
  0xc4   :  { %v1624_v19 = vpop.permute.xlu0 %779  ;;  %v1626_v20 = vpop.permute.xlu1 %784 }
  0xc8   :  { %v1628_v21 = vpop.permute.xlu0 %789  ;;  %v1630_v22 = vpop.permute.xlu1 %794 }
  0xcc   :  { %v1632_v23 = vpop.permute.xlu0 %799  ;;  %v1634_v24 = vpop.permute.xlu1 %804 }
  0xd0   :  { %v1636_v25 = vpop.permute.xlu0 %809  ;;  %v1638_v26 = vpop.permute.xlu1 %814 }
  0xd4   :  { %v1640_v27 = vpop.permute.xlu0 %819  ;;  %v1642_v28 = vpop.permute.xlu1 %824 }
  0xd8   :  { %v1644_v29 = vpop.permute.xlu0 %829  ;;  %v1646_v30 = vpop.permute.xlu1 %834 }
  0xdc   :  { %v1648_v31 = vpop.permute.xlu0 %839  ;;  %v1650_v32 = vpop.permute.xlu1 %844 }
  0xe0   :  { %v1656_v40 = vpop.permute.xlu0 %849  ;;  %v1662_v49 = vpop.permute.xlu1 %854 }
 0x168   :  { %v1095_v33 = vpop.f32.mrb[0].mxu0  ;;  %v1652_v34 = vpop.f32.mrb[0].mxu1 }
 0x169   :  { %v476_v35 = vadd.f32 %v1095_v33, %v155_v58  ;;  %v470_v36 = vpop.f32.mrb[1].mxu0  ;;  %v1654_v37 = vpop.f32.mrb[1].mxu1 }
 0x16a   :  { %v471_v38 = vadd.f32 %v470_v36, %v150_v57  ;;  %v1668_v33 = vpop.permute.xlu0 %259 }
 0x16b   :  { %vm630_vm1 = vcmp.gt.f32.partialorder %v476_v35, 0.0  ;;  %v662_v39 = vmul.f32 0.2, %v476_v35 }
 0x16c   :  { %vm629_vm2 = vcmp.gt.f32.partialorder %v471_v38, 0.0  ;;  %v661_v41 = vmul.f32 0.2, %v471_v38  ;;  %v1098_v43 = vpop.f32.mrb[2].mxu0  ;;  %v1658_v44 = vpop.f32.mrb[2].mxu1 }
 0x16d   :  { %v694_v42 = vsel %vm630_vm1, %v476_v35, %v662_v39  ;;  %v480_v47 = vpop.f32.mrb[3].mxu0  ;;  %v1660_v48 = vpop.f32.mrb[3].mxu1  ;;  %v486_v51 = vadd.f32 %v1098_v43, %v165_v60 }
 0x16e   :  { %v918_v45 = vmul.f32 %v765_v16, %v694_v42  ;;  %v693_v46 = vsel %vm629_vm2, %v471_v38, %v661_v41  ;;  %v481_v52 = vadd.f32 %v480_v47, %v160_v59 }
 0x16f   :  { %v917_v50 = vmul.f32 %v760_v15, %v693_v46  ;;  %vm632_vm3 = vcmp.gt.f32.partialorder %v486_v51, 0.0  ;;  %v664_v56 = vmul.f32 0.2, %v486_v51 }
 0x170   :  { %v1101_v53 = vpop.f32.mrb[4].mxu0  ;;  %v1664_v54 = vpop.f32.mrb[4].mxu1  ;;  %vm631_vm4 = vcmp.gt.f32.partialorder %v481_v52, 0.0  ;;  %v663_v16 = vmul.f32 0.2, %v481_v52 }
 0x171   :  { %v949_v55 = vadd.f32 %v918_v45, %v917_v50  ;;  %v490_v57 = vpop.f32.mrb[5].mxu0  ;;  %v1666_v58 = vpop.f32.mrb[5].mxu1  ;;  %v496_v35 = vadd.f32 %v1101_v53, %v1590_v62  ;;  %v696_v36 = vsel %vm632_vm3, %v486_v51, %v664_v56 }
 0x172   :  { %v695_v38 = vsel %vm631_vm4, %v481_v52, %v663_v16  ;;  %v491_v60 = vadd.f32 %v490_v57, %v1588_v61  ;;  %v1676_v45 = vpop.permute.xlu1 %859  ;;  %v920_v46 = vmul.f32 %v775_v18, %v696_v36 }
 0x173   :  { %v919_v39 = vmul.f32 %v770_v17, %v695_v38  ;;  %vm634_vm5 = vcmp.gt.f32.partialorder %v496_v35, 0.0  ;;  %v666_v43 = vmul.f32 0.2, %v496_v35  ;;  %v1684_v38 = vpop.permute.xlu0 %264 }
 0x174   :  { %v1104_v59 = vpop.f32.mrb[6].mxu0  ;;  %v1672_v15 = vpop.f32.mrb[6].mxu1  ;;  %vm633_vm6 = vcmp.gt.f32.partialorder %v491_v60, 0.0  ;;  %v665_v50 = vmul.f32 0.2, %v491_v60 }
 0x175   :  { %v500_v41 = vpop.f32.mrb[7].mxu0  ;;  %v1674_v42 = vpop.f32.mrb[7].mxu1  ;;  %v950_v47 = vadd.f32 %v949_v55, %v919_v39  ;;  %v506_v62 = vadd.f32 %v1104_v59, %v1594_v0  ;;  %v698_v61 = vsel %vm634_vm5, %v496_v35, %v666_v43 }
 0x176   :  { %v697_v53 = vsel %vm633_vm6, %v491_v60, %v665_v50  ;;  %v501_v18 = vadd.f32 %v500_v41, %v1592_v63  ;;  %v922_v55 = vmul.f32 %v1626_v20, %v698_v61 }
 0x177   :  { %v951_v56 = vadd.f32 %v950_v47, %v920_v46  ;;  %v921_v16 = vmul.f32 %v1624_v19, %v697_v53  ;;  %v668_v39 = vmul.f32 0.2, %v506_v62  ;;  %vm636_vm7 = vcmp.gt.f32.partialorder %v506_v62, 0.0  ;;  %v1693_v47 = vpop.permute.xlu1 %864 }
 0x178   :  { %v1107_v51 = vpop.f32.mrb[8].mxu0  ;;  %v1679_v52 = vpop.f32.mrb[8].mxu1  ;;  %vm635_vm8 = vcmp.gt.f32.partialorder %v501_v18, 0.0  ;;  %v667_v46 = vmul.f32 0.2, %v501_v18  ;;  %1795 = vst [vmem:[#allocation7_spill] sm:$0xff] %v1693_v47 }
 0x179   :  { %v510_v17 = vpop.f32.mrb[9].mxu0  ;;  %v1681_v57 = vpop.f32.mrb[9].mxu1  ;;  %v952_v36 = vadd.f32 %v951_v56, %v921_v16  ;;  %v516_v35 = vadd.f32 %v1107_v51, %v1598_v2  ;;  %v700_v50 = vsel %vm636_vm7, %v506_v62, %v668_v39 }
 0x17a   :  { %v699_v63 = vsel %vm635_vm8, %v501_v18, %v667_v46  ;;  %v511_v20 = vadd.f32 %v510_v17, %v1596_v1  ;;  %v1701_v2 = vpop.permute.xlu0 %269 }
 0x17b   :  { %v953_v19 = vadd.f32 %v952_v36, %v922_v55  ;;  %v923_v53 = vmul.f32 %v1628_v21, %v699_v63  ;;  %v670_v56 = vmul.f32 0.2, %v516_v35  ;;  %vm638_vm9 = vcmp.gt.f32.partialorder %v516_v35, 0.0 }
 0x17c   :  { %v1110_v0 = vpop.f32.mrb[10].mxu0  ;;  %v1688_v59 = vpop.f32.mrb[10].mxu1  ;;  %v924_v55 = vmul.f32 %v1630_v22, %v700_v50  ;;  %vm637_vm10 = vcmp.gt.f32.partialorder %v511_v20, 0.0  ;;  %v669_v18 = vmul.f32 0.2, %v511_v20 }
 0x17d   :  { %1794 = vst [vmem:[#allocation6_spill] sm:$0xff] %v1688_v59  ;;  %v520_v60 = vpop.f32.mrb[11].mxu0  ;;  %v1691_v43 = vpop.f32.mrb[11].mxu1  ;;  %v526_v51 = vadd.f32 %v1110_v0, %v1602_v4  ;;  %v954_v62 = vadd.f32 %v953_v19, %v923_v53  ;;  %v702_v17 = vsel %vm638_vm9, %v516_v35, %v670_v56 }
 0x17e   :  { %v701_v36 = vsel %vm637_vm10, %v511_v20, %v669_v18  ;;  %v1711_v4 = vpop.permute.xlu1 %869  ;;  %v1713_v22 = vpop.permute.xlu0 %274  ;;  %v926_v0 = vmul.f32 %v1634_v24, %v702_v17 }
 0x17f   :  { %v955_v39 = vadd.f32 %v954_v62, %v924_v55  ;;  %v925_v63 = vmul.f32 %v1632_v23, %v701_v36  ;;  %vm640_vm11 = vcmp.gt.f32.partialorder %v526_v51, 0.0 }
 0x180   :  { %v1113_v41 = vpop.f32.mrb[12].mxu0  ;;  %v1696_v61 = vpop.f32.mrb[12].mxu1 }
 0x181   :  { %1796 = vst [vmem:[#allocation8_spill] sm:$0xff] %v1696_v61  ;;  %v530_v16 = vpop.f32.mrb[13].mxu0  ;;  %v1699_v59 = vpop.f32.mrb[13].mxu1  ;;  %v672_v61 = vmul.f32 0.2, %v526_v51  ;;  %v956_v35 = vadd.f32 %v955_v39, %v925_v63  ;;  %v536_v50 = vadd.f32 %v1113_v41, %v1606_v6 }
 0x182   :  { %1797 = vst [vmem:[#allocation9_spill] sm:$0xff] %v1699_v59  ;;  %v521_v59 = vadd.f32 %v520_v60, %v1600_v3  ;;  %v531_v20 = vadd.f32 %v530_v16, %v1604_v5  ;;  %v1719_v62 = vpop.permute.xlu1 %874  ;;  %v1722_v17 = vpop.permute.xlu0 %279  ;;  %v551_v5 = vadd.f32 %v1654_v37, %v1612_v9  ;;  %v556_v16 = vadd.f32 %v1652_v34, %v1614_v10 }
 0x183   :  { %v704_v23 = vsel %vm640_vm11, %v526_v51, %v672_v61  ;;  %v957_v56 = vadd.f32 %v956_v35, %v926_v0  ;;  %v674_v60 = vmul.f32 0.2, %v536_v50  ;;  %vm642_vm13 = vcmp.gt.f32.partialorder %v536_v50, 0.0 }
 0x184   :  { %v1116_v1 = vpop.f32.mrb[14].mxu0  ;;  %v1705_v46 = vpop.f32.mrb[14].mxu1  ;;  %vm639_vm12 = vcmp.gt.f32.partialorder %v521_v59, 0.0  ;;  %v671_v19 = vmul.f32 0.2, %v521_v59  ;;  %vm641_vm14 = vcmp.gt.f32.partialorder %v531_v20, 0.0  ;;  %v928_v24 = vmul.f32 %v1638_v26, %v704_v23 }
 0x185   :  { %v540_v21 = vpop.f32.mrb[15].mxu0  ;;  %v1709_v47 = vpop.f32.mrb[15].mxu1  ;;  %v673_v55 = vmul.f32 0.2, %v531_v20  ;;  %v706_v6 = vsel %vm642_vm13, %v536_v50, %v674_v60  ;;  %v677_v0 = vmul.f32 0.2, %v551_v5  ;;  %v561_v9 = vadd.f32 %v1660_v48, %v1616_v11 }
 0x186   :  { %v703_v53 = vsel %vm639_vm12, %v521_v59, %v671_v19  ;;  %v541_v61 = vadd.f32 %v540_v21, %v1608_v7  ;;  %v930_v26 = vmul.f32 %v1642_v28, %v706_v6  ;;  %v1732_v63 = vpop.permute.xlu1 %879  ;;  %v285_v37 = vpop.permute.xlu0 %284  ;;  %vm645_vm1 = vcmp.gt.f32.partialorder %v551_v5, 0.0 }
 0x187   :  { %v927_v3 = vmul.f32 %v1636_v25, %v703_v53  ;;  %v705_v36 = vsel %vm641_vm14, %v531_v20, %v673_v55  ;;  %v546_v25 = vadd.f32 %v1116_v1, %v1610_v8  ;;  %v678_v7 = vmul.f32 0.2, %v556_v16 }
 0x188   :  { %v929_v59 = vmul.f32 %v1640_v27, %v705_v36  ;;  %vm643_vm0 = vcmp.gt.f32.partialorder %v541_v61, 0.0  ;;  %v675_v27 = vmul.f32 0.2, %v541_v61  ;;  %v566_v10 = vadd.f32 %v1658_v44, %v1618_v12 }
 0x189   :  { %v958_v18 = vadd.f32 %v957_v56, %v927_v3  ;;  %vm644_vm15 = vcmp.gt.f32.partialorder %v546_v25, 0.0  ;;  %v676_v39 = vmul.f32 0.2, %v546_v25  ;;  %vm646_vm2 = vcmp.gt.f32.partialorder %v556_v16, 0.0 }
 0x18a   :  { %v707_v1 = vsel %vm643_vm0, %v541_v61, %v675_v27  ;;  %v709_v21 = vsel %vm645_vm1, %v551_v5, %v677_v0  ;;  %v679_v35 = vmul.f32 0.2, %v561_v9  ;;  %v571_v19 = vadd.f32 %v1666_v58, %v1620_v13  ;;  %v1742_v50 = vpop.permute.xlu1 %884  ;;  %v290_v44 = vpop.permute.xlu0 %289 }
 0x18b   :  { %v959_v41 = vadd.f32 %v958_v18, %v928_v24  ;;  %v708_v34 = vsel %vm644_vm15, %v546_v25, %v676_v39  ;;  %v931_v28 = vmul.f32 %v1644_v29, %v707_v1  ;;  %vm647_vm3 = vcmp.gt.f32.partialorder %v561_v9, 0.0  ;;  %v1799_v39 = vld [vmem:[#allocation6_spill] sm:$0xff]  ;;  %v1801_v1 = vld [vmem:[#allocation8_spill] sm:$0xff] }
 0x18c   :  { %v932_v11 = vmul.f32 %v1646_v30, %v708_v34  ;;  %v710_v20 = vsel %vm646_vm2, %v556_v16, %v678_v7  ;;  %v680_v23 = vmul.f32 0.2, %v566_v10  ;;  %v576_v12 = vadd.f32 %v1664_v54, %v1622_v14 }
 0x18d   :  { %v960_v51 = vadd.f32 %v959_v41, %v929_v59  ;;  %v933_v53 = vmul.f32 %v1648_v31, %v709_v21  ;;  %vm648_vm4 = vcmp.gt.f32.partialorder %v566_v10, 0.0  ;;  %v711_v56 = vsel %vm647_vm3, %v561_v9, %v679_v35 }
 0x18e   :  { %v681_v3 = vmul.f32 0.2, %v571_v19  ;;  %v581_v13 = vadd.f32 %v1674_v42, %v1668_v33  ;;  %v934_v30 = vmul.f32 %v1650_v32, %v710_v20  ;;  %vm649_vm5 = vcmp.gt.f32.partialorder %v571_v19, 0.0  ;;  %v890_v54 = vpop.permute.xlu1 %889  ;;  %v295_v33 = vpop.permute.xlu0 %294 }
 0x18f   :  { %v961_v8 = vadd.f32 %v960_v51, %v930_v26  ;;  %v712_v60 = vsel %vm648_vm4, %v566_v10, %v680_v23  ;;  %v682_v55 = vmul.f32 0.2, %v576_v12  ;;  %v586_v24 = vadd.f32 %v1672_v15, %v1684_v38 }
 0x190   :  { %v935_v14 = vmul.f32 %v1656_v40, %v711_v56  ;;  %vm650_vm6 = vcmp.gt.f32.partialorder %v576_v12, 0.0  ;;  %v713_v18 = vsel %vm649_vm5, %v571_v19, %v681_v3  ;;  %v683_v36 = vmul.f32 0.2, %v581_v13 }
 0x191   :  { %v962_v48 = vadd.f32 %v961_v8, %v931_v28  ;;  %v591_v5 = vadd.f32 %v1681_v57, %v1701_v2  ;;  %v936_v32 = vmul.f32 %v1662_v49, %v712_v60  ;;  %vm651_vm7 = vcmp.gt.f32.partialorder %v581_v13, 0.0  ;;  %v1798_v57 = vld [vmem:[#allocation7_spill] sm:$0xff]  ;;  %v1800_v8 = vld [vmem:[#allocation9_spill] sm:$0xff] }
 0x192   :  { %v714_v6 = vsel %vm650_vm6, %v576_v12, %v682_v55  ;;  %v684_v59 = vmul.f32 0.2, %v586_v24  ;;  %v596_v15 = vadd.f32 %v1679_v52, %v1713_v22  ;;  %v937_v40 = vmul.f32 %v1676_v45, %v713_v18  ;;  %v895_v16 = vpop.permute.xlu1 %894  ;;  %v300_v9 = vpop.permute.xlu0 %299 }
 0x193   :  { %v963_v29 = vadd.f32 %v962_v48, %v932_v11  ;;  %vm652_vm8 = vcmp.gt.f32.partialorder %v586_v24, 0.0  ;;  %v715_v41 = vsel %vm651_vm7, %v581_v13, %v683_v36  ;;  %v685_v25 = vmul.f32 0.2, %v591_v5 }
 0x194   :  { %v601_v61 = vadd.f32 %v1691_v43, %v1722_v17  ;;  %v938_v2 = vmul.f32 %v1798_v57, %v714_v6  ;;  %vm653_vm9 = vcmp.gt.f32.partialorder %v591_v5, 0.0  ;;  %v716_v51 = vsel %vm652_vm8, %v586_v24, %v684_v59 }
 0x195   :  { %v964_v58 = vadd.f32 %v963_v29, %v933_v53  ;;  %v686_v26 = vmul.f32 0.2, %v596_v15  ;;  %v606_v0 = vadd.f32 %v1799_v39, %v285_v37  ;;  %v939_v52 = vmul.f32 %v1711_v4, %v715_v41 }
 0x196   :  { %vm654_vm10 = vcmp.gt.f32.partialorder %v596_v15, 0.0  ;;  %v717_v22 = vsel %vm653_vm9, %v591_v5, %v685_v25  ;;  %v687_v27 = vmul.f32 0.2, %v601_v61  ;;  %v611_v7 = vadd.f32 %v1800_v8, %v290_v44  ;;  %v900_v35 = vpop.permute.xlu1 %899  ;;  %v305_v48 = vpop.permute.xlu0 %304 }
 0x197   :  { %v965_v31 = vadd.f32 %v964_v58, %v934_v30  ;;  %v940_v43 = vmul.f32 %v1719_v62, %v716_v51  ;;  %vm655_vm11 = vcmp.gt.f32.partialorder %v601_v61, 0.0  ;;  %v718_v10 = vsel %vm654_vm10, %v596_v15, %v686_v26 }
 0x198   :  { %v688_v34 = vmul.f32 0.2, %v606_v0  ;;  %v616_v28 = vadd.f32 %v1801_v1, %v295_v33  ;;  %v941_v21 = vmul.f32 %v1732_v63, %v717_v22  ;;  %vm656_vm12 = vcmp.gt.f32.partialorder %v606_v0, 0.0 }
 0x199   :  { %v966_v42 = vadd.f32 %v965_v31, %v935_v14  ;;  %v719_v4 = vsel %vm655_vm11, %v601_v61, %v687_v27  ;;  %v689_v19 = vmul.f32 0.2, %v611_v7  ;;  %v621_v11 = vadd.f32 %v1709_v47, %v300_v9 }
 0x19a   :  { %v942_v20 = vmul.f32 %v1742_v50, %v718_v10  ;;  %vm657_vm13 = vcmp.gt.f32.partialorder %v611_v7, 0.0  ;;  %v720_v23 = vsel %vm656_vm12, %v606_v0, %v688_v34  ;;  %v690_v12 = vmul.f32 0.2, %v616_v28  ;;  %v905_v30 = vpop.permute.xlu1 %904  ;;  %v910_v31 = vpop.permute.xlu0 %909 }
 0x19b   :  { %v967_v38 = vadd.f32 %v966_v42, %v936_v32  ;;  %v626_v44 = vadd.f32 %v1705_v46, %v305_v48  ;;  %v943_v53 = vmul.f32 %v890_v54, %v719_v4  ;;  %vm658_vm14 = vcmp.gt.f32.partialorder %v616_v28, 0.0 }
 0x19c   :  { %v721_v63 = vsel %vm657_vm13, %v611_v7, %v689_v19  ;;  %v691_v56 = vmul.f32 0.2, %v621_v11  ;;  %v944_v3 = vmul.f32 %v895_v16, %v720_v23  ;;  %vm659_vm15 = vcmp.gt.f32.partialorder %v621_v11, 0.0 }
 0x19d   :  { %v968_v49 = vadd.f32 %v967_v38, %v937_v40  ;;  %v722_v58 = vsel %vm658_vm14, %v616_v28, %v690_v12  ;;  %v692_v47 = vmul.f32 0.2, %v626_v44  ;;  %v945_v60 = vmul.f32 %v900_v35, %v721_v63 }
 0x19e   :  { %vm660_vm0 = vcmp.gt.f32.partialorder %v626_v44, 0.0  ;;  %v723_v55 = vsel %vm659_vm15, %v621_v11, %v691_v56  ;;  %v946_v24 = vmul.f32 %v905_v30, %v722_v58  ;;  %v915_v36 = vpop.permute.xlu1 %914  ;;  %v992_v32 = vlaneseq  ;;  %v990_v25 = vpop.permute.xlu0 %989 }
 0x19f   :  { %v969_v45 = vadd.f32 %v968_v49, %v938_v2  ;;  %v724_v18 = vsel %vm660_vm0, %v626_v44, %v692_v47  ;;  %v947_v46 = vmul.f32 %v910_v31, %v723_v55 }
 0x1a0   :  { %v948_v5 = vmul.f32 %v915_v36, %v724_v18  ;;  %v993_v59 = vshrl.u32 %v992_v32, 7 }
 0x1a1   :  { %v970_v17 = vadd.f32 %v969_v45, %v939_v52 }
 0x1a2   :  { %v994_v38 = vsub.s32 0, %v993_v59 }
 0x1a3   :  { %v971_v37 = vadd.f32 %v970_v17, %v940_v43 }
 0x1a4   :  { %v995_v57 = vrot.slane %v990_v25, %v994_v38 }
 0x1a5   :  { %v972_v62 = vadd.f32 %v971_v37, %v941_v21 }
 0x1a7   :  { %v973_v29 = vadd.f32 %v972_v62, %v942_v20 }
 0x1a9   :  { %v974_v13 = vadd.f32 %v973_v29, %v943_v53 }
 0x1ab   :  { %v975_v50 = vadd.f32 %v974_v13, %v944_v3 }
 0x1ad   :  { %v976_v14 = vadd.f32 %v975_v50, %v945_v60 }
 0x1af   :  { %v977_v54 = vadd.f32 %v976_v14, %v946_v24 }
 0x1b1   :  { %v978_v33 = vadd.f32 %v977_v54, %v947_v46 }
 0x1b3   :  { %v979_v42 = vadd.f32 %v978_v33, %v948_v5 }
 0x1b5   :  { %v980_v6 = vrot.slane %v979_v42, 4 }
 0x1b7   :  { %v981_v15 = vadd.f32 %v980_v6, %v979_v42 }
 0x1b9   :  { %v982_v40 = vrot.slane %v981_v15, 2 }
 0x1bb   :  { %v983_v41 = vadd.f32 %v982_v40, %v981_v15 }
 0x1bd   :  { %v984_v61 = vrot.slane %v983_v41, 1 }
 0x1bf   :  { %v985_v2 = vadd.f32 %v984_v61, %v983_v41 }
 0x1c1   :  { %v996_v49 = vadd.f32 %v995_v57, %v985_v2 }
 0x1c3   :  { %vm997_vm1 = vcmp.gt.f32.partialorder %v996_v49, 0.0  ;;  %v998_v16 = vmul.f32 0.2, %v996_v49 }
 0x1c5   :  { %v999_v51 = vsel %vm997_vm1, %v996_v49, %v998_v16 }
 0x1c6   :  { %v1000_v26 = vsub.f32 0.0, %v999_v51 }
 0x1c8   :  { %v1001_v39 = vmul.f32 1.442695, %v1000_v26 }
 0x1ca   :  { %1153 = vpow2.f32 %v1001_v39 }
 0x1d4   :  { %v1154_v0 = vpop.eup %1153 }
 0x1d5   :  { %v1003_v9 = vadd.f32 1.0, %v1154_v0 }
 0x1d7   :  { %1155 = vrcp.f32 %v1003_v9 }
 0x1e1   :  { %v1156_v52 = vpop.eup %1155 }
 0x1e2   :  { %1005 = vst [vmem:[#allocation3] sm:$0x1] %v1156_v52 }
 0x1e3   :  { %1168 = shalt.err (!%p1165_p4)
}
 0x1e4   :  { %s1169_s18 = scalar_lea.hbm %s1793_s10, 16 }
 0x1e5   :  { %p1170_p5 = scmp.ne.s32.totalorder %s1793_s10, %s1169_s18  ;;  %p1173_p6 = scmp.lt.u32.totalorder %s1169_s18, %s1793_s10 }
 0x1e7   :  { %p1175_p7 = pnand %p1173_p6, %p1170_p5 }
 0x1e9   :  { %1178 = shalt.err (!%p1175_p7)
}
 0x1ea   :  { %1015 = dma.vmem_to_hbm [thread:$0]  %s1013_s8, 16, %s1793_s10, [#allocation4]  }
 0x1eb   :  { %1179 = dma.done.wait [#allocation4], 16  }
 0x1ec   :  { %1180 = vsyncadd [#allocation4], 4294967280 }
 0x1ed   :  { %1019 = vsyncpa [#allocation4], 1 }

</bundles_post_ra>
